<compile_context>
chip_gen: v7x
topology: tpu7x:2x2x1
jax: 0.10.0
libtpu: 0.0.40
codegen_flags: <defaults>
</compile_context>

<pallas_src>
import jax
import jax.numpy as jnp
from jax.experimental import pallas as pl
from jax.experimental.pallas import tpu as pltpu


def _rup(n, m=128):
    return ((n + m - 1) // m) * m


def _pad2(a, rows, cols):
    return jnp.pad(a, ((0, rows - a.shape[0]), (0, cols - a.shape[1])))


def value_kernel(s_ref, a_ref, w1_ref, w2a_ref, w2b_ref, w3_ref,
                 b1_ref, b2_ref, b3_ref, out_ref):
    # Inputs arrive f32 straight from HBM; cast to bf16 for the MXU.
    x_s = s_ref[...].astype(jnp.bfloat16)      # (tb, S)
    x_a = a_ref[...].astype(jnp.bfloat16)      # (tb, A)

    # x = relu(state @ W1 + b1)                 (bf16 MXU, fp32 accum/elementwise)
    x = jnp.dot(x_s, w1_ref[...], preferred_element_type=jnp.float32)
    x = jnp.maximum(x + b1_ref[...], 0.0)

    # h = relu(cat(x, action) @ W2 + b2)        (split-weight, concat-free)
    h = jnp.dot(x.astype(jnp.bfloat16), w2a_ref[...],
                preferred_element_type=jnp.float32)
    h = h + jnp.dot(x_a, w2b_ref[...], preferred_element_type=jnp.float32)
    h = jnp.maximum(h + b2_ref[...], 0.0)

    # q = h @ W3 + b3                           (narrow N = action_size output)
    o = jnp.dot(h.astype(jnp.bfloat16), w3_ref[...],
                preferred_element_type=jnp.float32) + b3_ref[...]
    out_ref[...] = o.astype(out_ref.dtype)


def value_model_forward(state, action, kparams, *, tb=1024):
    """Fused forward pass.  kparams are padded bf16 weights + fp32 biases."""
    w1p, w2ap, w2bp, w3p, b1p, b2p, b3p = kparams
    b, state_size = state.shape
    action_size = action.shape[1]
    h0p, h1p = w1p.shape[1], w2ap.shape[1]

    # Batch tile: large to amortize ~0.35us/step overhead, capped near B so tiny
    # batches don't allocate huge blocks.  For v7x pick tb <= B/2 so both
    # TensorCores get at least one tile.
    tb_eff = max(8, min(_rup(tb, 8), _rup(b, 8)))
    grid = (pl.cdiv(b, tb_eff),)

    flops = 2 * b * (state_size * h0p + h0p * h1p + action_size * h1p
                     + h1p * action_size)
    bytes_accessed = (b * (state_size + action_size) * 4       # inputs (f32)
                      + b * action_size * 4                    # output (f32)
                      + (w1p.size + w2ap.size + w2bp.size + w3p.size) * 2
                      + (b1p.size + b2p.size + b3p.size) * 4)

    out = pl.pallas_call(
        value_kernel,
        out_shape=jax.ShapeDtypeStruct((b, action_size), jnp.float32),
        grid=grid,
        in_specs=[
            pl.BlockSpec((tb_eff, state_size), lambda i: (i, 0)),   # state tile
            pl.BlockSpec((tb_eff, action_size), lambda i: (i, 0)),  # action tile
            pl.BlockSpec(w1p.shape, lambda i: (0, 0)),              # W1  (resident)
            pl.BlockSpec(w2ap.shape, lambda i: (0, 0)),             # W2a (resident)
            pl.BlockSpec(w2bp.shape, lambda i: (0, 0)),             # W2b (resident)
            pl.BlockSpec(w3p.shape, lambda i: (0, 0)),              # W3  (resident)
            pl.BlockSpec(b1p.shape, lambda i: (0, 0)),              # b1
            pl.BlockSpec(b2p.shape, lambda i: (0, 0)),              # b2
            pl.BlockSpec(b3p.shape, lambda i: (0, 0)),              # b3
        ],
        out_specs=pl.BlockSpec((tb_eff, action_size), lambda i: (i, 0)),
        compiler_params=pltpu.CompilerParams(
            dimension_semantics=("parallel",)),
        cost_estimate=pl.CostEstimate(
            flops=flops, transcendentals=0, bytes_accessed=bytes_accessed),
    )(state, action, w1p, w2ap, w2bp, w3p, b1p, b2p, b3p)
    return out


def init_params(key, state_size, action_size, hidden_dims):
    """nn.Linear-style init: U(-1/sqrt(fan_in), 1/sqrt(fan_in)); weights (in, out)."""
    h0, h1 = hidden_dims
    keys = jax.random.split(key, 6)

    def lin(kw, kb, fan_in, fan_out):
        bound = 1.0 / jnp.sqrt(float(fan_in))
        w = jax.random.uniform(kw, (fan_in, fan_out), jnp.float32, -bound, bound)
        bias = jax.random.uniform(kb, (1, fan_out), jnp.float32, -bound, bound)
        return w, bias

    w1, b1 = lin(keys[0], keys[1], state_size, h0)
    w2, b2 = lin(keys[2], keys[3], h0 + action_size, h1)   # layer sees cat(x, action)
    w3, b3 = lin(keys[4], keys[5], h1, action_size)
    return (w1, b1, w2, b2, w3, b3)


def prepare_kernel_params(params, state_size, action_size, hidden_dims):
    """Split W2, zero-pad only the 128-lane (N/K-hidden) dims, cast weights to
    bf16; keep the tiny K dims (state_size, action_size) and the narrow output
    dim (action_size) unpadded so no padded bytes ever hit HBM."""
    w1, b1, w2, b2, w3, b3 = params
    h0, h1 = hidden_dims
    h0p, h1p = _rup(h0), _rup(h1)

    w2a, w2b = w2[:h0], w2[h0:]

    w1p = _pad2(w1, state_size, h0p).astype(jnp.bfloat16)     # (S,   h0p)
    w2ap = _pad2(w2a, h0p, h1p).astype(jnp.bfloat16)          # (h0p, h1p)
    w2bp = _pad2(w2b, action_size, h1p).astype(jnp.bfloat16)  # (A,   h1p)
    w3p = _pad2(w3, h1p, action_size).astype(jnp.bfloat16)    # (h1p, A)

    b1p = _pad2(b1, 1, h0p).astype(jnp.float32)
    b2p = _pad2(b2, 1, h1p).astype(jnp.float32)
    b3p = b3.astype(jnp.float32)                              # (1, A)
    return (w1p, w2ap, w2bp, w3p, b1p, b2p, b3p)


def reference_forward(state, action, params):
    """Pure fp32 JAX reference matching the PyTorch module."""
    w1, b1, w2, b2, w3, b3 = params
    x = jax.nn.relu(state @ w1 + b1)
    x = jnp.concatenate([x, action], axis=1)
    x = jax.nn.relu(x @ w2 + b2)
    return x @ w3 + b3


if __name__ == "__main__":
    batch = 37                       # not a multiple of 8 -> exercises ragged last block
    state_size = 32
    action_size = 8
    hidden_dims = (300, 200)         # module defaults; padded to (384, 256) internally

    key = jax.random.PRNGKey(0)
    k_state, k_action, k_params = jax.random.split(key, 3)

    state = jax.random.normal(k_state, (batch, state_size), jnp.float32)
    action = jax.random.normal(k_action, (batch, action_size), jnp.float32)

    params = init_params(k_params, state_size, action_size, hidden_dims)
    kparams = prepare_kernel_params(params, state_size, action_size, hidden_dims)

    out = value_model_forward(state, action, kparams, tb=1024)
    out = jax.block_until_ready(out)

    ref = reference_forward(state, action, params)
    assert out.shape == (batch, action_size), out.shape
    # bf16 MXU operands with fp32 accumulation -> small quantization error vs fp32 ref.
    assert jnp.allclose(out, ref, atol=3e-2, rtol=3e-2), (
        f"max abs err {jnp.max(jnp.abs(out - ref))}")

    print("KERNEL_OK")
</pallas_src>

<mosaic_0001>
module attributes {stable_mosaic.version = 11 : i64} {
  func.func @value_kernel(%arg0: i32, %arg1: memref<40x32xf32, #tpu.memory_space<vmem>>, %arg2: memref<40x8xf32, #tpu.memory_space<vmem>>, %arg3: memref<32x384xbf16, #tpu.memory_space<vmem>>, %arg4: memref<384x256xbf16, #tpu.memory_space<vmem>>, %arg5: memref<8x256xbf16, #tpu.memory_space<vmem>>, %arg6: memref<256x8xbf16, #tpu.memory_space<vmem>>, %arg7: memref<1x384xf32, #tpu.memory_space<vmem>>, %arg8: memref<1x256xf32, #tpu.memory_space<vmem>>, %arg9: memref<1x8xf32, #tpu.memory_space<vmem>>, %arg10: memref<40x8xf32, #tpu.memory_space<vmem>>) attributes {dimension_semantics = [#tpu.dimension_semantics<parallel>], iteration_bounds = array<i64: 1>, scalar_prefetch = 0 : i64, scratch_operands = 0 : i64, tpu.core_type = #tpu.core_type<tc>, window_params = [{transform_indices = @transform_0, window_bounds = array<i64: 40, 32>}, {transform_indices = @transform_1, window_bounds = array<i64: 40, 8>}, {pipeline_mode = #tpu.pipeline_mode<synchronous>, transform_indices = @transform_2, window_bounds = array<i64: 32, 384>}, {pipeline_mode = #tpu.pipeline_mode<synchronous>, transform_indices = @transform_3, window_bounds = array<i64: 384, 256>}, {pipeline_mode = #tpu.pipeline_mode<synchronous>, transform_indices = @transform_4, window_bounds = array<i64: 8, 256>}, {pipeline_mode = #tpu.pipeline_mode<synchronous>, transform_indices = @transform_5, window_bounds = array<i64: 256, 8>}, {pipeline_mode = #tpu.pipeline_mode<synchronous>, transform_indices = @transform_6, window_bounds = array<i64: 1, 384>}, {pipeline_mode = #tpu.pipeline_mode<synchronous>, transform_indices = @transform_7, window_bounds = array<i64: 1, 256>}, {pipeline_mode = #tpu.pipeline_mode<synchronous>, transform_indices = @transform_8, window_bounds = array<i64: 1, 8>}, {transform_indices = @transform_9, window_bounds = array<i64: 40, 8>}]} {
    %c0 = arith.constant 0 : index
    %c0_0 = arith.constant 0 : index
    %0 = vector.load %arg1[%c0, %c0_0] : memref<40x32xf32, #tpu.memory_space<vmem>>, vector<40x32xf32>
    %1 = arith.truncf %0 : vector<40x32xf32> to vector<40x32xbf16>
    %c0_1 = arith.constant 0 : index
    %c0_2 = arith.constant 0 : index
    %2 = vector.load %arg2[%c0_1, %c0_2] : memref<40x8xf32, #tpu.memory_space<vmem>>, vector<40x8xf32>
    %3 = arith.truncf %2 : vector<40x8xf32> to vector<40x8xbf16>
    %c0_3 = arith.constant 0 : index
    %c0_4 = arith.constant 0 : index
    %4 = vector.load %arg3[%c0_3, %c0_4] : memref<32x384xbf16, #tpu.memory_space<vmem>>, vector<32x384xbf16>
    %cst = arith.constant dense<0.000000e+00> : vector<40x384xf32>
    %5 = tpu.matmul %1, %4, %cst {dimension_numbers = #tpu.dot_dimension_numbers<[1], [0], [0], [1], [0, 0, 1, 1], [], []>} : vector<40x32xbf16>, vector<32x384xbf16>, vector<40x384xf32> -> vector<40x384xf32>
    %c0_5 = arith.constant 0 : index
    %c0_6 = arith.constant 0 : index
    %6 = vector.load %arg7[%c0_5, %c0_6] : memref<1x384xf32, #tpu.memory_space<vmem>>, vector<1x384xf32>
    %7 = vector.broadcast %6 : vector<1x384xf32> to vector<40x384xf32>
    %8 = arith.addf %5, %7 : vector<40x384xf32>
    %cst_7 = arith.constant 0.000000e+00 : f32
    %9 = vector.broadcast %cst_7 : f32 to vector<40x384xf32>
    %10 = arith.maximumf %8, %9 : vector<40x384xf32>
    %11 = arith.truncf %10 : vector<40x384xf32> to vector<40x384xbf16>
    %c0_8 = arith.constant 0 : index
    %c0_9 = arith.constant 0 : index
    %12 = vector.load %arg4[%c0_8, %c0_9] : memref<384x256xbf16, #tpu.memory_space<vmem>>, vector<384x256xbf16>
    %cst_10 = arith.constant dense<0.000000e+00> : vector<40x256xf32>
    %13 = tpu.matmul %11, %12, %cst_10 {dimension_numbers = #tpu.dot_dimension_numbers<[1], [0], [0], [1], [0, 0, 1, 1], [], []>} : vector<40x384xbf16>, vector<384x256xbf16>, vector<40x256xf32> -> vector<40x256xf32>
    %c0_11 = arith.constant 0 : index
    %c0_12 = arith.constant 0 : index
    %14 = vector.load %arg5[%c0_11, %c0_12] : memref<8x256xbf16, #tpu.memory_space<vmem>>, vector<8x256xbf16>
    %cst_13 = arith.constant dense<0.000000e+00> : vector<40x256xf32>
    %15 = tpu.matmul %3, %14, %cst_13 {dimension_numbers = #tpu.dot_dimension_numbers<[1], [0], [0], [1], [0, 0, 1, 1], [], []>} : vector<40x8xbf16>, vector<8x256xbf16>, vector<40x256xf32> -> vector<40x256xf32>
    %16 = arith.addf %13, %15 : vector<40x256xf32>
    %c0_14 = arith.constant 0 : index
    %c0_15 = arith.constant 0 : index
    %17 = vector.load %arg8[%c0_14, %c0_15] : memref<1x256xf32, #tpu.memory_space<vmem>>, vector<1x256xf32>
    %18 = vector.broadcast %17 : vector<1x256xf32> to vector<40x256xf32>
    %19 = arith.addf %16, %18 : vector<40x256xf32>
    %cst_16 = arith.constant 0.000000e+00 : f32
    %20 = vector.broadcast %cst_16 : f32 to vector<40x256xf32>
    %21 = arith.maximumf %19, %20 : vector<40x256xf32>
    %22 = arith.truncf %21 : vector<40x256xf32> to vector<40x256xbf16>
    %c0_17 = arith.constant 0 : index
    %c0_18 = arith.constant 0 : index
    %23 = vector.load %arg6[%c0_17, %c0_18] : memref<256x8xbf16, #tpu.memory_space<vmem>>, vector<256x8xbf16>
    %cst_19 = arith.constant dense<0.000000e+00> : vector<40x8xf32>
    %24 = tpu.matmul %22, %23, %cst_19 {dimension_numbers = #tpu.dot_dimension_numbers<[1], [0], [0], [1], [0, 0, 1, 1], [], []>} : vector<40x256xbf16>, vector<256x8xbf16>, vector<40x8xf32> -> vector<40x8xf32>
    %c0_20 = arith.constant 0 : index
    %c0_21 = arith.constant 0 : index
    %25 = vector.load %arg9[%c0_20, %c0_21] : memref<1x8xf32, #tpu.memory_space<vmem>>, vector<1x8xf32>
    %26 = vector.broadcast %25 : vector<1x8xf32> to vector<40x8xf32>
    %27 = arith.addf %24, %26 : vector<40x8xf32>
    %c0_22 = arith.constant 0 : index
    %c0_23 = arith.constant 0 : index
    %28 = vector.load %arg10[%c0_22, %c0_23] : memref<40x8xf32, #tpu.memory_space<vmem>>, vector<40x8xf32>
    tpu.vector_store %arg10[%c0_22, %c0_23], %27 {strides = array<i32>} : memref<40x8xf32, #tpu.memory_space<vmem>>, vector<40x8xf32>,
    return
  }
  func.func @transform_0(%arg0: i32) -> (i32, i32) {
    %c0_i32 = arith.constant 0 : i32
    %c0_i32_0 = arith.constant 0 : i32
    return %arg0, %c0_i32 : i32, i32
  }
  func.func @transform_1(%arg0: i32) -> (i32, i32) {
    %c0_i32 = arith.constant 0 : i32
    %c0_i32_0 = arith.constant 0 : i32
    return %arg0, %c0_i32 : i32, i32
  }
  func.func @transform_2(%arg0: i32) -> (i32, i32) {
    %c0_i32 = arith.constant 0 : i32
    %c0_i32_0 = arith.constant 0 : i32
    %c0_i32_1 = arith.constant 0 : i32
    return %c0_i32, %c0_i32_0 : i32, i32
  }
  func.func @transform_3(%arg0: i32) -> (i32, i32) {
    %c0_i32 = arith.constant 0 : i32
    %c0_i32_0 = arith.constant 0 : i32
    %c0_i32_1 = arith.constant 0 : i32
    return %c0_i32, %c0_i32_0 : i32, i32
  }
  func.func @transform_4(%arg0: i32) -> (i32, i32) {
    %c0_i32 = arith.constant 0 : i32
    %c0_i32_0 = arith.constant 0 : i32
    %c0_i32_1 = arith.constant 0 : i32
    return %c0_i32, %c0_i32_0 : i32, i32
  }
  func.func @transform_5(%arg0: i32) -> (i32, i32) {
    %c0_i32 = arith.constant 0 : i32
    %c0_i32_0 = arith.constant 0 : i32
    %c0_i32_1 = arith.constant 0 : i32
    return %c0_i32, %c0_i32_0 : i32, i32
  }
  func.func @transform_6(%arg0: i32) -> (i32, i32) {
    %c0_i32 = arith.constant 0 : i32
    %c0_i32_0 = arith.constant 0 : i32
    %c0_i32_1 = arith.constant 0 : i32
    return %c0_i32, %c0_i32_0 : i32, i32
  }
  func.func @transform_7(%arg0: i32) -> (i32, i32) {
    %c0_i32 = arith.constant 0 : i32
    %c0_i32_0 = arith.constant 0 : i32
    %c0_i32_1 = arith.constant 0 : i32
    return %c0_i32, %c0_i32_0 : i32, i32
  }
  func.func @transform_8(%arg0: i32) -> (i32, i32) {
    %c0_i32 = arith.constant 0 : i32
    %c0_i32_0 = arith.constant 0 : i32
    %c0_i32_1 = arith.constant 0 : i32
    return %c0_i32, %c0_i32_0 : i32, i32
  }
  func.func @transform_9(%arg0: i32) -> (i32, i32) {
    %c0_i32 = arith.constant 0 : i32
    %c0_i32_0 = arith.constant 0 : i32
    return %arg0, %c0_i32 : i32, i32
  }
}

</mosaic_0001>

<bundles_post_ra>
// kernel: tpu_custom_call.1
= control target key start
LH: loop header
LB: loop body
LE: loop exit
PB: predicated region body
PF: predicated region fallthrough
CT: control target
= control target key end

     0   :  { %14 = vsyncpa [#allocation3], 0  ;;  %s1290_s30 = smov [#allocation2]   ;;  %s1524_s0 = inlined_call_operand.vmem [shape: f32[37,32], index: 0, kind: input, shape index: {}]   ;;  %s1525_s1 = inlined_call_operand.vmem [shape: f32[37,8], index: 1, kind: input, shape index: {}]   ;;  %s1526_s2 = inlined_call_operand.vmem [shape: bf16[32,384], index: 2, kind: input, shape index: {}]   ;;  %s1527_s3 = inlined_call_operand.hbm [shape: bf16[384,256], index: 3, kind: input, shape index: {}]   ;;  %s1528_s4 = inlined_call_operand.vmem [shape: bf16[8,256], index: 4, kind: input, shape index: {}]   ;;  %s1529_s5 = inlined_call_operand.vmem [shape: bf16[256,8], index: 5, kind: input, shape index: {}]   ;;  %s1530_s6 = inlined_call_operand.vmem [shape: f32[1,384], index: 6, kind: input, shape index: {}]   ;;  %s1531_s7 = inlined_call_operand.vmem [shape: f32[1,256], index: 7, kind: input, shape index: {}]   ;;  %s1532_s8 = inlined_call_operand.vmem [shape: f32[1,8], index: 8, kind: input, shape index: {}]   ;;  %s1533_s9 = inlined_call_operand.vmem [shape: f32[37,8], index: 9, kind: output, shape index: {}]  }
   0x1   :  { %s26_s10 = sshll.u32 %s1290_s30, 4  ;;  %s1266_s13 = scalar_lea.hbm %s1527_s3, 6144  ;;  %s27_s10 = int_to_ptr.vmem [resolvable:$true] %s26_s10 }
   0x2   :  { %p1267_p0 = scmp.ne.s32.totalorder %s1527_s3, %s1266_s13  ;;  %p1270_p1 = scmp.lt.u32.totalorder %s1266_s13, %s1527_s3 }
   0x4   :  { %p1272_p2 = pnand %p1270_p1, %p1267_p0 }
   0x6   :  { %1275 = shalt.err (!%p1272_p2)
}
   0x7   :  { %s1276_s18 = scalar_lea.vmem %s27_s10, 6144  ;;  %p1281_p4 = scmp.lt.s32.totalorder %s27_s10, %s27_s10 }
   0x8   :  { %p1277_p3 = scmp.ne.s32.totalorder %s27_s10, %s1276_s18  ;;  %p1282_p5 = scmp.lt.s32.totalorder %s1276_s18, %s1276_s18 }
   0xa   :  { %p1283_p6 = por %p1282_p5, %p1281_p4 }
   0xc   :  { %p1284_p7 = pnand %p1283_p6, %p1277_p3 }
   0xe   :  { %1287 = shalt.err (!%p1284_p7)
}
   0xf   :  { %s1291_s19 = smov 128   ;;  %s1292_s20 = smov 8  }
  0x10   :  { %32 = dma.hbm_to_vmem [thread:$0]  %s1527_s3, 6144, %s27_s10, [#allocation3], %s1291_s19, %s1291_s19, %s1292_s20  }
  0x11   :  { %1288 = dma.done.wait [#allocation3], 6144  }
  0x12   :  { %1289 = vsyncadd [#allocation3], 4294961152  ;;  %v1293_v0 = vmov 0   ;;  %v1168_v1 = vld [vmem:[%s1526_s2 + $0x4] ss:$12 sps:$4 sm:$0xff]   ;;  %v48_v6 = vld [vmem:[%s1524_s0 + $0x8] sm:$0xff] }
  0x13   :  { %162 = vmatprep.mubr.bf16.mxu0 %v1293_v0  ;;  %172 = vmatprep.mubr.bf16.mxu1 %v1293_v0  ;;  %v1170_v2 = vld [vmem:[%s1526_s2] ss:$12 sps:$4 sm:$0xff]   ;;  %v1171_v3 = vld [vmem:[%s1526_s2 + $0x1c] ss:$12 sps:$4 sm:$0xff]   ;;  %v1173_v4 = vld [vmem:[%s1526_s2 + $0x18] ss:$12 sps:$4 sm:$0xff]  }
  0x14   :  { %130 = vmatprep.subr.bf16.mxu0 %v1168_v1  ;;  %1142 = vmatprep.subr.bf16.mxu1 %v1168_v1  ;;  %v47_v5 = vld [vmem:[%s1524_s0] sm:$0xff]  ;;  %v49_v7 = vld [vmem:[%s1524_s0 + $0x10] sm:$0xff]  ;;  %v50_v8 = vld [vmem:[%s1524_s0 + $0x18] sm:$0xff]  ;;  %vm335_vm0 = vcmask 1043456   ;;  %vm120_vm1 = vcmask 261120   ;;  %v1294_v15 = vmov 0.0  }
  0x15   :  { %131 = vmatpush1.bf16.msra.mxu0 %v1170_v2  ;;  %1144 = vmatpush1.bf16.msra.mxu1 %v1170_v2  ;;  %v52_v9 = vpack.c.bf16 %v48_v6, %v47_v5  ;;  %v1384_v10 = vpack.c.bf16 %v50_v8, %v49_v7  ;;  %v319_v11 = vld [vmem:[%s1528_s4] sm:$0xff]  ;;  %v1174_v12 = vld [vmem:[%s1526_s2 + $0x8] ss:$12 sps:$4 sm:$0xff]   ;;  %vm325_vm2 = vcmask 64512   ;;  %vm1295_vm3 = vmmov 0   ;;  %v58_v33 = vld [vmem:[%s1525_s1 + $0x18] sm:$0xff] }
  0x16   :  { %132 = vmatprep.subr.bf16.mxu0 %v1171_v3  ;;  %1143 = vmatprep.subr.bf16.mxu1 %v1171_v3  ;;  %v1017_v13 = vcombine.high %v319_v11, %v319_v11  ;;  %v1016_v14 = vcombine.low %v319_v11, %v319_v11  ;;  %v51_v16 = vld [vmem:[%s1524_s0 + $0x20] sm:$0xff]  ;;  %v1180_v19 = vld [vmem:[#allocation2 + $0x4] ss:$8 sps:$4 sm:$0xff]   ;;  %v1178_v24 = vld [vmem:[#allocation2] ss:$8 sps:$4 sm:$0xff]  }
  0x17   :  { %v1175_v17 = vld [vmem:[%s1526_s2 + $0x20] ss:$12 sps:$4 sm:$0xff]   ;;  %v54_v22 = vpack.c.bf16 %v51_v16, %v51_v16  ;;  %v1183_v25 = vld [vmem:[#allocation2 + $0x14] ss:$8 sps:$4 sm:$0xff]   ;;  %v1184_v28 = vld [vmem:[#allocation2 + $0x20] ss:$8 sps:$4 sm:$0xff]  }
  0x18   :  { %v337_v18 = vsel %vm335_vm0, %v1016_v14, 0  ;;  %v55_v20 = vld [vmem:[%s1525_s1] sm:$0xff]  ;;  %v56_v21 = vld [vmem:[%s1525_s1 + $0x8] sm:$0xff]  ;;  %v57_v32 = vld [vmem:[%s1525_s1 + $0x10] sm:$0xff]  ;;  %v73_v14 = vlaneseq }
  0x19   :  { %133 = vmatpush1.bf16.msra.mxu0 %v1173_v4  ;;  %1145 = vmatpush1.bf16.msra.mxu1 %v1173_v4  ;;  %v60_v23 = vpack.c.bf16 %v56_v21, %v55_v20  ;;  %v1181_v26 = vld [vmem:[#allocation2 + $0x10] ss:$8 sps:$4 sm:$0xff]   ;;  %v1186_v27 = vld [vmem:[#allocation2 + $0x24] ss:$8 sps:$4 sm:$0xff]   ;;  %v1189_v29 = vld [vmem:[#allocation2 + $0x34] ss:$8 sps:$4 sm:$0xff]   ;;  %v61_v35 = vpack.c.bf16 %v58_v33, %v57_v32 }
  0x1a   :  { %1126 = vmatprep.subr.bf16.mxu1 %v1294_v15  ;;  %1018 = vmatprep.subr.msk.bf16.mxu0 %vm335_vm0, %v1017_v13  ;;  %v1214_v30 = vld [vmem:[#allocation2 + $0x100] ss:$8 sps:$4 sm:$0xff]   ;;  %v1216_v31 = vld [vmem:[#allocation2 + $0x104] ss:$8 sps:$4 sm:$0xff]   ;;  %v1187_v34 = vld [vmem:[#allocation2 + $0x30] ss:$8 sps:$4 sm:$0xff]  }
  0x1b   :  { %v1192_v36 = vld [vmem:[#allocation2 + $0x44] ss:$8 sps:$4 sm:$0xff]   ;;  %v1222_v37 = vld [vmem:[#allocation2 + $0x114] ss:$8 sps:$4 sm:$0xff]   ;;  %v1220_v38 = vld [vmem:[#allocation2 + $0x110] ss:$8 sps:$4 sm:$0xff]  }
  0x1c   :  { %1010 = vmatmul.mubr.msk.bf16.vlgmr.msra.gmra.mrb[0].mxu0 %vm120_vm1, %v52_v9  ;;  %1011 = vmatmul.mubr.msk.bf16.vlgmr.msra.gmra.mrb[0].mxu1 %vm120_vm1, %v1384_v10  ;;  %v1190_v39 = vld [vmem:[#allocation2 + $0x40] ss:$8 sps:$4 sm:$0xff]   ;;  %v1195_v40 = vld [vmem:[#allocation2 + $0x54] ss:$8 sps:$4 sm:$0xff]   ;;  %v1193_v41 = vld [vmem:[#allocation2 + $0x50] ss:$8 sps:$4 sm:$0xff]  }
  0x1d   :  { %1127 = vmatpush3.bf16.msra.mxu1 %v1174_v12  ;;  %182 = vmatprep.mubr.bf16.mxu1 %v1293_v0  ;;  %v1198_v42 = vld [vmem:[#allocation2 + $0x64] ss:$8 sps:$4 sm:$0xff]   ;;  %v1196_v43 = vld [vmem:[#allocation2 + $0x60] ss:$8 sps:$4 sm:$0xff]   ;;  %v1201_v44 = vld [vmem:[#allocation2 + $0x74] ss:$8 sps:$4 sm:$0xff]  }
  0x1e   :  { %1128 = vmatprep.subr.bf16.mxu1 %v1294_v15  ;;  %343 = vmatpush1.bf16.msra.mxu0 %v337_v18  ;;  %v1199_v45 = vld [vmem:[#allocation2 + $0x70] ss:$8 sps:$4 sm:$0xff]   ;;  %v1204_v46 = vld [vmem:[#allocation2 + $0x84] ss:$8 sps:$4 sm:$0xff]   ;;  %v1202_v47 = vld [vmem:[#allocation2 + $0x80] ss:$8 sps:$4 sm:$0xff]  }
  0x1f   :  { %374 = vmatprep.mubr.bf16.mxu0 %v1293_v0  ;;  %643 = vmatprep.subr.bf16.mxu0 %v1180_v19  ;;  %v1207_v48 = vld [vmem:[#allocation2 + $0x94] ss:$8 sps:$4 sm:$0xff]   ;;  %v1205_v49 = vld [vmem:[#allocation2 + $0x90] ss:$8 sps:$4 sm:$0xff]   ;;  %v1210_v50 = vld [vmem:[#allocation2 + $0xa4] ss:$8 sps:$4 sm:$0xff]  }
  0x20   :  { %v1208_v51 = vld [vmem:[#allocation2 + $0xa0] ss:$8 sps:$4 sm:$0xff]   ;;  %v1213_v52 = vld [vmem:[#allocation2 + $0xb4] ss:$8 sps:$4 sm:$0xff]   ;;  %v1211_v53 = vld [vmem:[#allocation2 + $0xb0] ss:$8 sps:$4 sm:$0xff]  }
  0x21   :  { %1129 = vmatpush3.bf16.msra.mxu1 %v1175_v17  ;;  %v1219_v54 = vld [vmem:[#allocation2 + $0xc4] ss:$8 sps:$4 sm:$0xff]   ;;  %v1217_v55 = vld [vmem:[#allocation2 + $0xc0] ss:$8 sps:$4 sm:$0xff]   ;;  %v1225_v56 = vld [vmem:[#allocation2 + $0xd4] ss:$8 sps:$4 sm:$0xff]  }
  0x22   :  { %704 = vmatprep.subr.bf16.mxu1 %v1216_v31  ;;  %v1223_v57 = vld [vmem:[#allocation2 + $0xd0] ss:$8 sps:$4 sm:$0xff]   ;;  %v1228_v58 = vld [vmem:[#allocation2 + $0x124] ss:$8 sps:$4 sm:$0xff]   ;;  %v1226_v59 = vld [vmem:[#allocation2 + $0x120] ss:$8 sps:$4 sm:$0xff]  }
  0x23   :  { %v59_v60 = vld [vmem:[%s1525_s1 + $0x20] sm:$0xff]  ;;  %v1231_v62 = vld [vmem:[#allocation2 + $0xe4] ss:$8 sps:$4 sm:$0xff]   ;;  %v1229_v63 = vld [vmem:[#allocation2 + $0xe0] ss:$8 sps:$4 sm:$0xff]  }
  0x24   :  { %1012 = vmatmul.mubr.msk.bf16.gmra.mrb[4].mxu1 %vm120_vm1, %v54_v22  ;;  %1019 = vmatmul.mubr.msk.bf16.vlgmr.msra.gmra.mrb[4].mxu0 %vm325_vm2, %v60_v23  ;;  %v62_v61 = vpack.c.bf16 %v59_v60, %v59_v60  ;;  %v1234_v1 = vld [vmem:[#allocation2 + $0x134] ss:$8 sps:$4 sm:$0xff]   ;;  %v1232_v2 = vld [vmem:[#allocation2 + $0x130] ss:$8 sps:$4 sm:$0xff]   ;;  %v1240_v5 = vld [vmem:[#allocation2 + $0x144] ss:$8 sps:$4 sm:$0xff]  }
  0x25   :  { %1130 = vmatprep.mubr.msk.bf16.mxu1 %vm1295_vm3, %v1294_v15  ;;  %644 = vmatpush1.bf16.msra.mxu0 %v1178_v24  ;;  %v1237_v3 = vld [vmem:[#allocation2 + $0xf4] ss:$8 sps:$4 sm:$0xff]   ;;  %v1235_v4 = vld [vmem:[#allocation2 + $0xf0] ss:$8 sps:$4 sm:$0xff]   ;;  %v1238_v6 = vld [vmem:[#allocation2 + $0x140] ss:$8 sps:$4 sm:$0xff]  }
  0x26   :  { %645 = vmatprep.subr.bf16.mxu0 %v1183_v25  ;;  %384 = vmatprep.mubr.bf16.mxu0 %v1293_v0  ;;  %v1243_v7 = vld [vmem:[#allocation2 + $0x154] ss:$8 sps:$4 sm:$0xff]   ;;  %v1241_v8 = vld [vmem:[#allocation2 + $0x150] ss:$8 sps:$4 sm:$0xff]  }
  0x27   :  { %v1249_v11 = vld [vmem:[#allocation2 + $0x174] ss:$8 sps:$4 sm:$0xff]   ;;  %v1247_v12 = vld [vmem:[#allocation2 + $0x170] ss:$8 sps:$4 sm:$0xff]  }
  0x28   :  { %v1250_v13 = vld [vmem:[%s1529_s5 + $0x40] sm:$0xff]  }
  0x29   :  { %646 = vmatpush1.bf16.msra.mxu0 %v1181_v26  ;;  %v71_v17 = vld [vmem:[%s1530_s6] sm:$0x7] }
  0x2a   :  { %647 = vmatprep.subr.bf16.mxu0 %v1186_v27 }
  0x2c   :  { %1131 = vmatmul.mubr.msk.bf16.vlgmr.msra.gmra.mrb[8].mxu1 %vm120_vm1, %v52_v9  ;;  %1020 = vmatmul.mubr.msk.bf16.gmra.mrb[8].mxu0 %vm325_vm2, %v61_v35  ;;  %v1246_v9 = vld [vmem:[#allocation2 + $0x164] ss:$8 sps:$4 sm:$0xff]  }
  0x2d   :  { %1134 = vmatprep.mubr.msk.bf16.mxu1 %vm1295_vm3, %v1294_v15  ;;  %648 = vmatpush1.bf16.msra.mxu0 %v1184_v28 }
  0x2e   :  { %649 = vmatprep.subr.bf16.mxu0 %v1189_v29  ;;  %705 = vmatpush1.bf16.msra.mxu1 %v1214_v30 }
  0x2f   :  { %706 = vmatprep.subr.bf16.mxu1 %v1222_v37  ;;  %394 = vmatprep.mubr.bf16.mxu0 %v1293_v0 }
  0x31   :  { %650 = vmatpush1.bf16.msra.mxu0 %v1187_v34 }
  0x32   :  { %651 = vmatprep.subr.bf16.mxu0 %v1192_v36  ;;  %707 = vmatpush1.bf16.msra.mxu1 %v1220_v38 }
  0x33   :  { %708 = vmatprep.subr.bf16.mxu1 %v1228_v58 }
  0x34   :  { %1135 = vmatmul.mubr.msk.bf16.gmra.mrb[12].mxu1 %vm120_vm1, %v1384_v10  ;;  %1021 = vmatmul.mubr.msk.bf16.gmra.mrb[12].mxu0 %vm325_vm2, %v62_v61  ;;  %v1244_v10 = vld [vmem:[#allocation2 + $0x160] ss:$8 sps:$4 sm:$0xff]  }
  0x35   :  { %1138 = vmatprep.mubr.msk.bf16.mxu1 %vm1295_vm3, %v1294_v15  ;;  %652 = vmatpush1.bf16.msra.mxu0 %v1190_v39  ;;  %v1435_v15 = vshrl.u32 %v73_v14, 7 }
  0x36   :  { %653 = vmatprep.subr.bf16.mxu0 %v1195_v40  ;;  %709 = vmatpush1.bf16.msra.mxu1 %v1226_v59 }
  0x37   :  { %710 = vmatprep.subr.bf16.mxu1 %v1234_v1  ;;  %v75_v16 = vsub.s32 0, %v1435_v15  ;;  %v79_v18 = vsub.s32 1, %v1435_v15 }
  0x39   :  { %654 = vmatpush1.bf16.msra.mxu0 %v1193_v41  ;;  %v76_v19 = vrot.slane %v71_v17, %v75_v16  ;;  %v80_v20 = vrot.slane %v71_v17, %v79_v18 }
  0x3a   :  { %655 = vmatprep.subr.bf16.mxu0 %v1198_v42  ;;  %711 = vmatpush1.bf16.msra.mxu1 %v1232_v2 }
  0x3b   :  { %712 = vmatprep.subr.bf16.mxu1 %v1240_v5  ;;  %v1251_v5 = vld [vmem:[%s1529_s5] sm:$0xff]  }
  0x3c   :  { %1139 = vmatmul.mubr.msk.bf16.gmra.mrb[16].mxu1 %vm120_vm1, %v54_v22 }
  0x3d   :  { %656 = vmatpush1.bf16.msra.mxu0 %v1196_v43  ;;  %736 = vmatprep.mubr.bf16.mxu1 %v1293_v0 }
  0x3e   :  { %657 = vmatprep.subr.bf16.mxu0 %v1201_v44  ;;  %713 = vmatpush1.bf16.msra.mxu1 %v1238_v6 }
  0x3f   :  { %714 = vmatprep.subr.bf16.mxu1 %v1243_v7  ;;  %v1252_v7 = vld [vmem:[%s1529_s5 + $0x48] sm:$0xff]  }
  0x41   :  { %658 = vmatpush1.bf16.msra.mxu0 %v1199_v45 }
  0x42   :  { %659 = vmatprep.subr.bf16.mxu0 %v1204_v46  ;;  %715 = vmatpush1.bf16.msra.mxu1 %v1241_v8 }
  0x43   :  { %716 = vmatprep.subr.bf16.mxu1 %v1246_v9 }
  0x45   :  { %660 = vmatpush1.bf16.msra.mxu0 %v1202_v47 }
  0x46   :  { %661 = vmatprep.subr.bf16.mxu0 %v1207_v48  ;;  %717 = vmatpush1.bf16.msra.mxu1 %v1244_v10 }
  0x47   :  { %718 = vmatprep.subr.bf16.mxu1 %v1249_v11 }
  0x49   :  { %662 = vmatpush1.bf16.msra.mxu0 %v1205_v49 }
  0x4a   :  { %663 = vmatprep.subr.bf16.mxu0 %v1210_v50  ;;  %719 = vmatpush1.bf16.msra.mxu1 %v1247_v12 }
  0x4b   :  { %1092 = vmatprep.subr.bf16.mxu1 %v1250_v13 }
  0x4d   :  { %664 = vmatpush1.bf16.msra.mxu0 %v1208_v51  ;;  %v83_v51 = vsub.s32 2, %v1435_v15 }
  0x4e   :  { %665 = vmatprep.subr.bf16.mxu0 %v1213_v52 }
  0x51   :  { %666 = vmatpush1.bf16.msra.mxu0 %v1211_v53 }
  0x52   :  { %667 = vmatprep.subr.bf16.mxu0 %v1219_v54 }
  0x55   :  { %668 = vmatpush1.bf16.msra.mxu0 %v1217_v55  ;;  %v84_v55 = vrot.slane %v71_v17, %v83_v51  ;;  %v765_v51 = vld [vmem:[%s1531_s7] sm:$0x3] }
  0x56   :  { %669 = vmatprep.subr.bf16.mxu0 %v1225_v56 }
  0x59   :  { %670 = vmatpush1.bf16.msra.mxu0 %v1223_v57 }
  0x5a   :  { %671 = vmatprep.subr.bf16.mxu0 %v1231_v62 }
  0x5d   :  { %672 = vmatpush1.bf16.msra.mxu0 %v1229_v63 }
  0x5e   :  { %673 = vmatprep.subr.bf16.mxu0 %v1237_v3 }
  0x61   :  { %674 = vmatpush1.bf16.msra.mxu0 %v1235_v4 }
  0xef   :  { %v164_v21 = vpop.f32.mrb[0].mxu0  ;;  %v174_v22 = vpop.f32.mrb[0].mxu1 }
  0xf0   :  { %v165_v23 = vadd.f32 %v164_v21, %v76_v19  ;;  %v175_v24 = vadd.f32 %v174_v22, %v76_v19  ;;  %v166_v25 = vpop.f32.mrb[1].mxu0  ;;  %v176_v26 = vpop.f32.mrb[1].mxu1 }
  0xf1   :  { %v167_v27 = vadd.f32 %v166_v25, %v80_v20  ;;  %v177_v28 = vadd.f32 %v176_v26, %v80_v20  ;;  %v168_v29 = vpop.f32.mrb[2].mxu0  ;;  %v178_v30 = vpop.f32.mrb[2].mxu1 }
  0xf2   :  { %v247_v31 = vmax.f32 %v165_v23, 0.0  ;;  %v169_v32 = vadd.f32 %v168_v29, %v76_v19  ;;  %v179_v33 = vadd.f32 %v178_v30, %v76_v19  ;;  %v170_v34 = vpop.f32.mrb[3].mxu0  ;;  %v180_v35 = vpop.f32.mrb[3].mxu1  ;;  %v253_v39 = vmax.f32 %v175_v24, 0.0 }
  0xf3   :  { %v248_v36 = vmax.f32 %v167_v27, 0.0  ;;  %v171_v37 = vadd.f32 %v170_v34, %v80_v20  ;;  %v181_v38 = vadd.f32 %v180_v35, %v80_v20  ;;  %v254_v42 = vmax.f32 %v177_v28, 0.0  ;;  %v1256_v34 = vld [vmem:[%s1529_s5 + $0x58] sm:$0xff]  }
  0xf4   :  { %v250_v40 = vmax.f32 %v169_v32, 0.0  ;;  %v256_v41 = vmax.f32 %v179_v33, 0.0  ;;  %v1253_v32 = vld [vmem:[%s1529_s5 + $0x8] sm:$0xff]   ;;  %v1254_v33 = vld [vmem:[%s1529_s5 + $0x50] sm:$0xff]   ;;  %v1257_v35 = vld [vmem:[%s1529_s5 + $0x18] sm:$0xff]  }
  0xf5   :  { %v251_v43 = vmax.f32 %v171_v37, 0.0  ;;  %v257_v44 = vmax.f32 %v181_v38, 0.0  ;;  %v1259_v37 = vld [vmem:[%s1529_s5 + $0x20] sm:$0xff]   ;;  %v1260_v38 = vld [vmem:[%s1529_s5 + $0x68] sm:$0xff]  }
  0xf6   :  { %v262_v45 = vpack.c.bf16 %v250_v40, %v247_v31  ;;  %v265_v46 = vpack.c.bf16 %v256_v41, %v253_v39  ;;  %v1261_v39 = vld [vmem:[%s1529_s5 + $0x28] sm:$0xff]   ;;  %v1262_v40 = vld [vmem:[%s1529_s5 + $0x70] sm:$0xff]  }
  0xf7   :  { %v263_v47 = vpack.c.bf16 %v251_v43, %v248_v36  ;;  %v266_v48 = vpack.c.bf16 %v257_v44, %v254_v42  ;;  %v184_v49 = vpop.f32.mrb[4].mxu1  ;;  %v1258_v36 = vld [vmem:[%s1529_s5 + $0x60] sm:$0xff]   ;;  %v1263_v41 = vld [vmem:[%s1529_s5 + $0x30] sm:$0xff]   ;;  %v1264_v42 = vld [vmem:[%s1529_s5 + $0x78] sm:$0xff]  }
  0xf8   :  { %v186_v50 = vpop.f32.mrb[5].mxu1  ;;  %v185_v58 = vadd.f32 %v184_v49, %v76_v19  ;;  %v1265_v43 = vld [vmem:[%s1529_s5 + $0x38] sm:$0xff]  }
  0xf9   :  { %v187_v52 = vadd.f32 %v186_v50, %v80_v20  ;;  %v188_v53 = vpop.f32.mrb[6].mxu1  ;;  %675 = vmatprep.mubr.bf16.mxu0 %v263_v47 }
  0xfa   :  { %v189_v54 = vpop.f32.mrb[7].mxu1  ;;  %676 = vmatmul.mubr.bf16.vlgmr.msra.gmra.mrb[4].mxu0 %v262_v45  ;;  %v259_v2 = vmax.f32 %v185_v58, 0.0  ;;  %v770_v53 = vrot.slane %v765_v51, %v75_v16 }
  0xfb   :  { %685 = vmatprep.mubr.bf16.mxu0 %v266_v48  ;;  %v260_v56 = vmax.f32 %v187_v52, 0.0 }
  0xfc   :  { %v268_v9 = vpack.c.bf16 %v259_v2, %v259_v2 }
  0xfd   :  { %v269_v61 = vpack.c.bf16 %v260_v56, %v260_v56 }
  0xff   :  { %v225_v57 = vpop.f32.mrb[8].mxu1 }
 0x100   :  { %v226_v59 = vadd.f32 %v225_v57, %v84_v55  ;;  %v1132_v60 = vpop.f32.mrb[9].mxu1 }
 0x101   :  { %v228_v62 = vpop.f32.mrb[10].mxu1 }
 0x102   :  { %v229_v63 = vadd.f32 %v228_v62, %v84_v55  ;;  %v1133_v1 = vpop.f32.mrb[11].mxu1  ;;  %686 = vmatmul.mubr.bf16.gmra.mrb[8].mxu0 %v265_v46  ;;  %v249_v3 = vmax.f32 %v226_v59, 0.0 }
 0x103   :  { %695 = vmatprep.mubr.bf16.mxu0 %v269_v61 }
 0x104   :  { %v252_v4 = vmax.f32 %v229_v63, 0.0 }
 0x106   :  { %v264_v6 = vpack.c.bf16 %v252_v4, %v249_v3 }
 0x107   :  { %v233_v8 = vpop.f32.mrb[12].mxu1  ;;  %v396_v28 = vpop.f32.mrb[12].mxu0 }
 0x108   :  { %v234_v10 = vadd.f32 %v233_v8, %v84_v55  ;;  %v1136_v11 = vpop.f32.mrb[13].mxu1  ;;  %737 = vmatmul.mubr.bf16.vlgmr.msra.gmra.mrb[20].mxu1 %v264_v6  ;;  %v398_v29 = vpop.f32.mrb[13].mxu0 }
 0x109   :  { %v236_v12 = vpop.f32.mrb[14].mxu1  ;;  %746 = vmatprep.mubr.bf16.mxu1 %v1293_v0  ;;  %1093 = vmatpush3.bf16.msra.mxu1 %v1251_v5  ;;  %v400_v30 = vpop.f32.mrb[14].mxu0 }
 0x10a   :  { %v237_v13 = vadd.f32 %v236_v12, %v84_v55  ;;  %v1137_v14 = vpop.f32.mrb[15].mxu1  ;;  %696 = vmatmul.mubr.bf16.gmra.mrb[16].mxu0 %v268_v9  ;;  %1094 = vmatprep.subr.bf16.mxu1 %v1252_v7  ;;  %v255_v17 = vmax.f32 %v234_v10, 0.0  ;;  %v401_v31 = vpop.f32.mrb[15].mxu0 }
 0x10c   :  { %v258_v19 = vmax.f32 %v237_v13, 0.0 }
 0x10d   :  { %1095 = vmatpush3.bf16.msra.mxu1 %v1253_v32 }
 0x10e   :  { %v267_v20 = vpack.c.bf16 %v258_v19, %v255_v17  ;;  %1096 = vmatprep.subr.bf16.mxu1 %v1254_v33 }
 0x10f   :  { %v241_v21 = vpop.f32.mrb[16].mxu1 }
 0x110   :  { %747 = vmatmul.mubr.bf16.gmra.mrb[24].mxu1 %v267_v20  ;;  %v242_v22 = vadd.f32 %v241_v21, %v84_v55  ;;  %v1140_v23 = vpop.f32.mrb[17].mxu1  ;;  %v774_v55 = vrot.slane %v765_v51, %v79_v18 }
 0x111   :  { %v244_v24 = vpop.f32.mrb[18].mxu1  ;;  %756 = vmatprep.mubr.bf16.mxu1 %v1293_v0  ;;  %v1255_v0 = vld [vmem:[%s1529_s5 + $0x10] sm:$0xff]  }
 0x112   :  { %v261_v25 = vmax.f32 %v242_v22, 0.0  ;;  %v1141_v26 = vpop.f32.mrb[19].mxu1  ;;  %1097 = vmatpush3.bf16.msra.mxu1 %v1255_v0 }
 0x113   :  { %1098 = vmatprep.subr.bf16.mxu1 %v1256_v34 }
 0x114   :  { %v270_v27 = vpack.c.bf16 %v261_v25, %v261_v25 }
 0x116   :  { %1099 = vmatpush3.bf16.msra.mxu1 %v1257_v35 }
 0x117   :  { %1100 = vmatprep.subr.bf16.mxu1 %v1258_v36 }
 0x118   :  { %757 = vmatmul.mubr.bf16.gmra.mrb[28].mxu1 %v270_v27 }
 0x11a   :  { %1101 = vmatpush3.bf16.msra.mxu1 %v1259_v37 }
 0x11b   :  { %1102 = vmatprep.subr.bf16.mxu1 %v1260_v38 }
 0x11e   :  { %1103 = vmatpush3.bf16.msra.mxu1 %v1261_v39 }
 0x11f   :  { %1104 = vmatprep.subr.bf16.mxu1 %v1262_v40 }
 0x122   :  { %1105 = vmatpush3.bf16.msra.mxu1 %v1263_v41 }
 0x123   :  { %1106 = vmatprep.subr.bf16.mxu1 %v1264_v42 }
 0x126   :  { %1107 = vmatpush3.bf16.msra.mxu1 %v1265_v43 }
 0x1cd   :  { %v677_v44 = vpop.f32.mrb[4].mxu0 }
 0x1ce   :  { %v679_v45 = vpop.f32.mrb[5].mxu0 }
 0x1cf   :  { %v681_v46 = vpop.f32.mrb[6].mxu0 }
 0x1d0   :  { %v683_v47 = vpop.f32.mrb[7].mxu0 }
 0x1d5   :  { %v687_v48 = vpop.f32.mrb[8].mxu0 }
 0x1d6   :  { %v689_v49 = vpop.f32.mrb[9].mxu0 }
 0x1d7   :  { %v691_v50 = vpop.f32.mrb[10].mxu0 }
 0x1d8   :  { %v693_v52 = vpop.f32.mrb[11].mxu0 }
 0x1db   :  { %v738_v54 = vpop.f32.mrb[20].mxu1 }
 0x1dc   :  { %v1146_v56 = vadd.f32 %v738_v54, %v677_v44  ;;  %v740_v57 = vpop.f32.mrb[21].mxu1 }
 0x1dd   :  { %v1147_v58 = vadd.f32 %v740_v57, %v679_v45  ;;  %v697_v59 = vpop.f32.mrb[16].mxu0  ;;  %v742_v60 = vpop.f32.mrb[22].mxu1 }
 0x1de   :  { %v777_v61 = vadd.f32 %v1146_v56, %v770_v53  ;;  %v698_v62 = vadd.f32 %v697_v59, %v396_v28  ;;  %v1148_v63 = vadd.f32 %v742_v60, %v681_v46  ;;  %v699_v1 = vpop.f32.mrb[17].mxu0  ;;  %v744_v2 = vpop.f32.mrb[23].mxu1  ;;  %v1070_v46 = vld [vmem:[%s1532_s8] ss:$0 sm:$0xff] }
 0x1df   :  { %v778_v3 = vadd.f32 %v1147_v58, %v774_v55  ;;  %v700_v4 = vadd.f32 %v699_v1, %v398_v29  ;;  %v1149_v5 = vadd.f32 %v744_v2, %v683_v47  ;;  %v701_v6 = vpop.f32.mrb[18].mxu0 }
 0x1e0   :  { %v779_v7 = vadd.f32 %v1148_v63, %v770_v53  ;;  %v702_v16 = vpop.f32.mrb[19].mxu0  ;;  %v787_v9 = vmax.f32 %v777_v61, 0.0 }
 0x1e1   :  { %v780_v8 = vadd.f32 %v1149_v5, %v774_v55  ;;  %v788_v18 = vmax.f32 %v778_v3, 0.0 }
 0x1e2   :  { %v789_v15 = vmax.f32 %v779_v7, 0.0 }
 0x1e3   :  { %v790_v10 = vmax.f32 %v780_v8, 0.0  ;;  %v748_v11 = vpop.f32.mrb[24].mxu1 }
 0x1e4   :  { %v797_v12 = vpack.c.bf16 %v789_v15, %v787_v9  ;;  %v1150_v13 = vadd.f32 %v748_v11, %v687_v48  ;;  %v750_v14 = vpop.f32.mrb[25].mxu1 }
 0x1e5   :  { %v1151_v17 = vadd.f32 %v750_v14, %v689_v49  ;;  %v752_v19 = vpop.f32.mrb[26].mxu1  ;;  %v798_v20 = vpack.c.bf16 %v790_v10, %v788_v18 }
 0x1e6   :  { %v781_v21 = vadd.f32 %v1150_v13, %v770_v53  ;;  %v1152_v22 = vadd.f32 %v752_v19, %v691_v50  ;;  %v754_v23 = vpop.f32.mrb[27].mxu1 }
 0x1e7   :  { %v782_v24 = vadd.f32 %v1151_v17, %v774_v55  ;;  %v1153_v25 = vadd.f32 %v754_v23, %v693_v52  ;;  %970 = vmatprep.mubr.bf16.mxu1 %v798_v20 }
 0x1e8   :  { %v783_v26 = vadd.f32 %v1152_v22, %v770_v53  ;;  %971 = vmatmul.mubr.bf16.vlgmr.msra.gmra.mrb[32].mxu1 %v797_v12  ;;  %v791_v28 = vmax.f32 %v781_v21, 0.0 }
 0x1e9   :  { %v784_v27 = vadd.f32 %v1153_v25, %v774_v55  ;;  %v792_v30 = vmax.f32 %v782_v24, 0.0 }
 0x1ea   :  { %v793_v29 = vmax.f32 %v783_v26, 0.0 }
 0x1eb   :  { %v794_v31 = vmax.f32 %v784_v27, 0.0  ;;  %v758_v32 = vpop.f32.mrb[28].mxu1 }
 0x1ec   :  { %v759_v33 = vadd.f32 %v758_v32, %v698_v62  ;;  %v760_v0 = vpop.f32.mrb[29].mxu1  ;;  %v799_v34 = vpack.c.bf16 %v793_v29, %v791_v28 }
 0x1ed   :  { %v761_v35 = vadd.f32 %v760_v0, %v700_v4  ;;  %v762_v36 = vpop.f32.mrb[30].mxu1  ;;  %v800_v37 = vpack.c.bf16 %v794_v31, %v792_v30 }
 0x1ee   :  { %v785_v38 = vadd.f32 %v770_v53, %v759_v33  ;;  %v763_v39 = vpop.f32.mrb[31].mxu1 }
 0x1ef   :  { %v786_v40 = vadd.f32 %v774_v55, %v761_v35  ;;  %978 = vmatprep.mubr.bf16.mxu1 %v800_v37 }
 0x1f0   :  { %979 = vmatmul.mubr.bf16.gmra.mrb[36].mxu1 %v799_v34  ;;  %v795_v42 = vmax.f32 %v785_v38, 0.0 }
 0x1f1   :  { %v796_v41 = vmax.f32 %v786_v40, 0.0 }
 0x1f2   :  { %v801_v44 = vpack.c.bf16 %v795_v42, %v795_v42 }
 0x1f3   :  { %v802_v43 = vpack.c.bf16 %v796_v41, %v796_v41 }
 0x1f5   :  { %986 = vmatprep.mubr.bf16.mxu1 %v802_v43 }
 0x1f8   :  { %987 = vmatmul.mubr.bf16.gmra.mrb[40].mxu1 %v801_v44 }
 0x2bb   :  { %v1108_v45 = vpop.f32.mrb[32].mxu1 }
 0x2bc   :  { %v1109_v47 = vpop.f32.mrb[33].mxu1 }
 0x2bd   :  { %v1110_v48 = vadd.f32 %v1109_v47, %v1108_v45  ;;  %v1111_v49 = vpop.f32.mrb[34].mxu1 }
 0x2be   :  { %v1112_v50 = vpop.f32.mrb[35].mxu1 }
 0x2bf   :  { %v973_v51 = vadd.f32 %v1110_v48, %v1070_v46  ;;  %v1113_v52 = vadd.f32 %v1112_v50, %v1111_v49 }
 0x2c1   :  { %994 = vst.msk [vmem:[%s1533_s9] sm:$0xff] %vm325_vm2, %v973_v51  ;;  %v976_v53 = vadd.f32 %v1113_v52, %v1070_v46 }
 0x2c3   :  { %995 = vst.msk [vmem:[%s1533_s9 + $0x8] sm:$0xff] %vm325_vm2, %v976_v53  ;;  %v1114_v54 = vpop.f32.mrb[36].mxu1 }
 0x2c4   :  { %v1115_v55 = vpop.f32.mrb[37].mxu1 }
 0x2c5   :  { %v1116_v56 = vadd.f32 %v1115_v55, %v1114_v54  ;;  %v1117_v57 = vpop.f32.mrb[38].mxu1 }
 0x2c6   :  { %v1118_v58 = vpop.f32.mrb[39].mxu1 }
 0x2c7   :  { %v981_v59 = vadd.f32 %v1116_v56, %v1070_v46  ;;  %v1119_v60 = vadd.f32 %v1118_v58, %v1117_v57 }
 0x2c9   :  { %996 = vst.msk [vmem:[%s1533_s9 + $0x10] sm:$0xff] %vm325_vm2, %v981_v59  ;;  %v984_v61 = vadd.f32 %v1119_v60, %v1070_v46 }
 0x2cb   :  { %997 = vst.msk [vmem:[%s1533_s9 + $0x18] sm:$0xff] %vm325_vm2, %v984_v61  ;;  %v1120_v62 = vpop.f32.mrb[40].mxu1 }
 0x2cc   :  { %v1121_v63 = vpop.f32.mrb[41].mxu1 }
 0x2cd   :  { %v1122_v1 = vadd.f32 %v1121_v63, %v1120_v62  ;;  %v1123_v2 = vpop.f32.mrb[42].mxu1 }
 0x2ce   :  { %v1124_v3 = vpop.f32.mrb[43].mxu1 }
 0x2cf   :  { %v989_v4 = vadd.f32 %v1122_v1, %v1070_v46 }
 0x2d1   :  { %998 = vst.msk [vmem:[%s1533_s9 + $0x20] sm:$0xff] %vm325_vm2, %v989_v4 }
 0x2d2   :  { %1003 = vsyncpa [#allocation3], 1 }

</bundles_post_ra>
